<compile_context>
chip_gen: v7x
topology: tpu7x:2x2x1
jax: 0.10.0
libtpu: 0.0.40
codegen_flags: <defaults>
</compile_context>

<pallas_src>
import jax
import jax.numpy as jnp
from jax.experimental import pallas as pl
from jax.experimental.pallas import tpu as pltpu  # noqa: F401  (TPU backend)

# ----- config (mirrors the torch config fields used by EncoderLayer) -----
B, S, H = 2, 8, 32          # batch, seq len, d_hidden
N_HEAD, D_HEAD = 4, 8       # n_head, d_head
HD = N_HEAD * D_HEAD        # 32
D_FF = 64                   # d_ff
EPS = 1e-6                  # layer_norm_epsilon
SCALE = 1.0 / (D_HEAD ** 0.5)
NEG_INF = -1000000000.0
BS = B * S                  # 16 flattened rows
NS = N_HEAD * S             # 32 head-packed rows per batch

# ----- packed-parameter slab layout (single (W_ROWS, W_COLS) f32 slab) -----
ROW_WQKV = 0                      # (H,    3*HD) fused Wq|Wk|Wv   (32, 96)
ROW_WO   = ROW_WQKV + H           # (HD,   H)    W_O              (32, 32)
ROW_W1   = ROW_WO + HD            # (H,    D_FF) conv1 weight     (32, 64)
ROW_W2   = ROW_W1 + H             # (D_FF, H)    conv2 weight     (64, 32)
ROW_BD   = ROW_W2 + D_FF          # (NS,   HD)   block-diag head selector
ROW_BQKV = ROW_BD + NS            # 1 row: bq|bk|bv (96 lanes)
ROW_BO   = ROW_BQKV + 1           # each small vector gets its own lane-0 row
ROW_G1   = ROW_BO + 1
ROW_BE1  = ROW_G1 + 1
ROW_BC1  = ROW_BE1 + 1
ROW_BC2  = ROW_BC1 + 1
ROW_G2   = ROW_BC2 + 1
ROW_BE2  = ROW_G2 + 1
W_ROWS   = ROW_BE2 + 1            # 200  (= 25 * 8 sublanes)
W_COLS   = 3 * HD                 # 96


def _layer_norm(x, gamma, beta):
    mean = jnp.mean(x, axis=-1, keepdims=True)
    var = jnp.mean((x - mean) ** 2, axis=-1, keepdims=True)
    return (x - mean) * jax.lax.rsqrt(var + EPS) * gamma + beta


def encoder_layer_kernel(xm_ref, w_ref, out_ref, attn_ref):
    xm = xm_ref[...]                          # (B*S, H + S) = [x | additive mask]
    x2 = xm[:, 0:H]                           # (16, 32)
    am = xm[:, H:H + S]                       # (16, 8) additive mask (0 / -1e9)

    # bias / LayerNorm rows (all lane-0 aligned slices of the single slab)
    b_qkv = w_ref[ROW_BQKV:ROW_BQKV + 1, 0:3 * HD]      # (1, 96)
    b_o = w_ref[ROW_BO:ROW_BO + 1, 0:H]
    g1 = w_ref[ROW_G1:ROW_G1 + 1, 0:H]
    be1 = w_ref[ROW_BE1:ROW_BE1 + 1, 0:H]
    bc1 = w_ref[ROW_BC1:ROW_BC1 + 1, 0:D_FF]
    bc2 = w_ref[ROW_BC2:ROW_BC2 + 1, 0:H]
    g2 = w_ref[ROW_G2:ROW_G2 + 1, 0:H]
    be2 = w_ref[ROW_BE2:ROW_BE2 + 1, 0:H]

    # Fused Q|K|V projection: one (16,32) @ (32,96) matmul.
    w_qkv = w_ref[ROW_WQKV:ROW_WQKV + H, 0:3 * HD]
    qkv = jnp.dot(x2, w_qkv, preferred_element_type=jnp.float32) + b_qkv   # (16, 96)

    q3 = qkv[:, 0:HD].reshape(B, S, HD)                 # (2, 8, 32)
    k3 = qkv[:, HD:2 * HD].reshape(B, S, HD)
    v3 = qkv[:, 2 * HD:3 * HD].reshape(B, S, HD)

    # Constant block-diagonal head selector (rides along in the weight slab).
    bd = w_ref[ROW_BD:ROW_BD + NS, 0:HD]                # (32, 32)

    # Replicate queries across the head row-groups and mask to block-diagonal,
    # so a single batched matmul yields every head's scores at once.
    q_rep = jnp.broadcast_to(q3[:, None], (B, N_HEAD, S, HD)).reshape(B, NS, HD)
    q_bd = q_rep * bd[None]                             # (2, 32, 32)
    scores = jnp.einsum('brd,bkd->brk', q_bd, k3,
                        preferred_element_type=jnp.float32) * SCALE         # (2, 32, 8)

    # Additive mask (already float 0 / -1e9), replicated across heads.
    am_rep = jnp.broadcast_to(am.reshape(B, 1, S, S),
                              (B, N_HEAD, S, S)).reshape(B, NS, S)
    scores = scores + am_rep

    # Plain last-axis softmax (softmax axis == lane axis in this layout).
    m = jnp.max(scores, axis=-1, keepdims=True)
    e = jnp.exp(scores - m)
    p = e * pl.reciprocal(jnp.sum(e, axis=-1, keepdims=True), approx=False)  # (2, 32, 8)
    attn_ref[...] = p.reshape(B * N_HEAD, S, S)

    # Context: one matmul per batch against the full packed V, then block-diag
    # mask + collapse of the head row-groups (3 VPU adds).
    t = jnp.einsum('brk,bkd->brd', p, v3,
                   preferred_element_type=jnp.float32)  # (2, 32, 32)
    t4 = (t * bd[None]).reshape(B, N_HEAD, S, HD)
    ctx = sum(t4[:, h] for h in range(N_HEAD)).reshape(BS, HD)               # (16, 32)

    # Output projection: ONE (16,32) @ (32,32) matmul.
    w_o = w_ref[ROW_WO:ROW_WO + HD, 0:H]
    attn_out = jnp.dot(ctx, w_o, preferred_element_type=jnp.float32) + b_o

    # TODO(synk): dropout layers are identity (inference / eval mode).
    ln1 = _layer_norm(x2 + attn_out, g1, be1)

    # Position-wise FFN (Conv1d k=1 == per-position linear).
    w1 = w_ref[ROW_W1:ROW_W1 + H, 0:D_FF]
    w2 = w_ref[ROW_W2:ROW_W2 + D_FF, 0:H]
    h1 = jnp.maximum(jnp.dot(ln1, w1, preferred_element_type=jnp.float32) + bc1, 0.0)
    ffn = jnp.dot(h1, w2, preferred_element_type=jnp.float32) + bc2

    out_ref[...] = _layer_norm(ffn + ln1, g2, be2)      # (16, 32)


def _pack_params(p):
    """Pack every weight, the block-diag selector and every small vector into
    one (W_ROWS, W_COLS) slab -> a single input DMA stream."""
    w = jnp.zeros((W_ROWS, W_COLS), jnp.float32)
    w = w.at[ROW_WQKV:ROW_WQKV + H, 0:3 * HD].set(
        jnp.concatenate([p['wq'], p['wk'], p['wv']], axis=1))
    w = w.at[ROW_WO:ROW_WO + HD, 0:H].set(p['wo'])
    w = w.at[ROW_W1:ROW_W1 + H, 0:D_FF].set(p['w1'])
    w = w.at[ROW_W2:ROW_W2 + D_FF, 0:H].set(p['w2'])
    # Block-diagonal head selector: row r belongs to head r//S, col c to head c//D_HEAD.
    bd = (jnp.arange(NS)[:, None] // S == jnp.arange(HD)[None, :] // D_HEAD)
    w = w.at[ROW_BD:ROW_BD + NS, 0:HD].set(bd.astype(jnp.float32))
    rows = (
        (ROW_BQKV, jnp.concatenate([p['bq'], p['bk'], p['bv']], axis=1)),
        (ROW_BO, p['bo']), (ROW_G1, p['g1']), (ROW_BE1, p['be1']),
        (ROW_BC1, p['bc1']), (ROW_BC2, p['bc2']),
        (ROW_G2, p['g2']), (ROW_BE2, p['be2']),
    )
    for r, v in rows:
        w = w.at[r:r + 1, 0:v.shape[-1]].set(v)
    return w


def encoder_layer(x, mask, params):
    wslab = _pack_params(params)
    # Pre-expanded additive float mask (0 / -1e9), lane-concatenated with x so
    # the kernel has exactly 2 input streams.
    addmask = jnp.where(mask != 0, jnp.float32(NEG_INF), jnp.float32(0.0))
    xm = jnp.concatenate([x.reshape(B * S, H).astype(jnp.float32),
                          addmask.reshape(B * S, S)], axis=1)        # (16, 40)
    out_flat, attn_flat = pl.pallas_call(
        encoder_layer_kernel,
        out_shape=(jax.ShapeDtypeStruct((B * S, H), jnp.float32),
                   jax.ShapeDtypeStruct((B * N_HEAD, S, S), jnp.float32)),
    )(xm, wslab)
    # Wrapper-side reshapes are free layout plumbing (contiguous row-major).
    return out_flat.reshape(B, S, H), attn_flat.reshape(B, N_HEAD, S, S)


# ----- pure-JAX reference (mirrors the torch forward pass) -----
def reference(x, mask, p):
    q = (x @ p['wq'] + p['bq']).reshape(B, S, N_HEAD, D_HEAD).transpose(0, 2, 1, 3)
    k = (x @ p['wk'] + p['bk']).reshape(B, S, N_HEAD, D_HEAD).transpose(0, 2, 1, 3)
    v = (x @ p['wv'] + p['bv']).reshape(B, S, N_HEAD, D_HEAD).transpose(0, 2, 1, 3)
    scores = jnp.einsum('bhqd,bhkd->bhqk', q, k) * SCALE
    scores = jnp.where(mask[:, None, :, :] != 0, NEG_INF, scores)
    prob = jax.nn.softmax(scores, axis=-1)
    ctx = jnp.einsum('bhqk,bhkd->bhqd', prob, v)
    ctx = ctx.transpose(0, 2, 1, 3).reshape(B, S, N_HEAD * D_HEAD)
    attn_out = ctx @ p['wo'] + p['bo']
    ln1 = _layer_norm(x + attn_out, p['g1'], p['be1'])
    h1 = jnp.maximum(ln1 @ p['w1'] + p['bc1'], 0.0)
    ffn = h1 @ p['w2'] + p['bc2']
    return _layer_norm(ffn + ln1, p['g2'], p['be2']), prob


def make_params(key):
    ks = jax.random.split(key, 8)
    sd = 0.05
    p = {
        'wq': jax.random.normal(ks[0], (H, HD), jnp.float32) * sd,
        'bq': jax.random.normal(ks[1], (1, HD), jnp.float32) * sd,
        'wk': jax.random.normal(ks[2], (H, HD), jnp.float32) * sd,
        'bk': jax.random.normal(ks[3], (1, HD), jnp.float32) * sd,
        'wv': jax.random.normal(ks[4], (H, HD), jnp.float32) * sd,
        'bv': jax.random.normal(ks[5], (1, HD), jnp.float32) * sd,
        'wo': jax.random.normal(ks[6], (HD, H), jnp.float32) * sd,
        'bo': jax.random.normal(ks[7], (1, H), jnp.float32) * sd,
        'g1': jnp.ones((1, H), jnp.float32),
        'be1': jnp.zeros((1, H), jnp.float32),
        'g2': jnp.ones((1, H), jnp.float32),
        'be2': jnp.zeros((1, H), jnp.float32),
    }
    ks2 = jax.random.split(ks[7], 4)
    p['w1'] = jax.random.normal(ks2[0], (H, D_FF), jnp.float32) * sd
    p['bc1'] = jax.random.normal(ks2[1], (1, D_FF), jnp.float32) * sd
    p['w2'] = jax.random.normal(ks2[2], (D_FF, H), jnp.float32) * sd
    p['bc2'] = jax.random.normal(ks2[3], (1, H), jnp.float32) * sd
    return p


if __name__ == "__main__":
    key = jax.random.PRNGKey(0)
    kx, kp = jax.random.split(key)
    x = jax.random.normal(kx, (B, S, H), jnp.float32)

    # Key-padding style mask: batch 0 keeps all 8 positions, batch 1 masks last 2 keys.
    valid = jnp.array([S, S - 2])
    key_mask = (jnp.arange(S)[None, :] >= valid[:, None])          # (B, S)
    mask = jnp.broadcast_to(key_mask[:, None, :], (B, S, S)).astype(jnp.int32)

    params = make_params(kp)

    out, attn_prob = encoder_layer(x, mask, params)
    jax.block_until_ready((out, attn_prob))

    ref_out, ref_prob = reference(x, mask, params)
    assert jnp.allclose(out, ref_out, atol=1e-4, rtol=1e-4), "output mismatch"
    assert jnp.allclose(attn_prob, ref_prob, atol=1e-4, rtol=1e-4), "attn_prob mismatch"

    print("KERNEL_OK")
</pallas_src>

<mosaic_0001>
module attributes {stable_mosaic.version = 11 : i64} {
  func.func @encoder_layer_kernel(%arg0: memref<16x40xf32, #tpu.memory_space<vmem>>, %arg1: memref<200x96xf32, #tpu.memory_space<vmem>>, %arg2: memref<16x32xf32, #tpu.memory_space<vmem>>, %arg3: memref<8x8x8xf32, #tpu.memory_space<vmem>>) attributes {dimension_semantics = [], scalar_prefetch = 0 : i64, scratch_operands = 0 : i64, tpu.core_type = #tpu.core_type<tc>} {
    %c0 = arith.constant 0 : index
    %c0_0 = arith.constant 0 : index
    %0 = vector.load %arg0[%c0, %c0_0] : memref<16x40xf32, #tpu.memory_space<vmem>>, vector<16x40xf32>
    %1 = vector.extract_strided_slice %0 {offsets = [0, 0], sizes = [16, 32], strides = [1, 1]} : vector<16x40xf32> to vector<16x32xf32>
    %2 = vector.extract_strided_slice %0 {offsets = [0, 32], sizes = [16, 8], strides = [1, 1]} : vector<16x40xf32> to vector<16x8xf32>
    %c192 = arith.constant 192 : index
    %c0_1 = arith.constant 0 : index
    %3 = vector.load %arg1[%c192, %c0_1] : memref<200x96xf32, #tpu.memory_space<vmem>>, vector<1x96xf32>
    %c193 = arith.constant 193 : index
    %c0_2 = arith.constant 0 : index
    %4 = vector.load %arg1[%c193, %c0_2] : memref<200x96xf32, #tpu.memory_space<vmem>>, vector<1x32xf32>
    %c194 = arith.constant 194 : index
    %c0_3 = arith.constant 0 : index
    %5 = vector.load %arg1[%c194, %c0_3] : memref<200x96xf32, #tpu.memory_space<vmem>>, vector<1x32xf32>
    %c195 = arith.constant 195 : index
    %c0_4 = arith.constant 0 : index
    %6 = vector.load %arg1[%c195, %c0_4] : memref<200x96xf32, #tpu.memory_space<vmem>>, vector<1x32xf32>
    %c196 = arith.constant 196 : index
    %c0_5 = arith.constant 0 : index
    %7 = vector.load %arg1[%c196, %c0_5] : memref<200x96xf32, #tpu.memory_space<vmem>>, vector<1x64xf32>
    %c197 = arith.constant 197 : index
    %c0_6 = arith.constant 0 : index
    %8 = vector.load %arg1[%c197, %c0_6] : memref<200x96xf32, #tpu.memory_space<vmem>>, vector<1x32xf32>
    %c198 = arith.constant 198 : index
    %c0_7 = arith.constant 0 : index
    %9 = vector.load %arg1[%c198, %c0_7] : memref<200x96xf32, #tpu.memory_space<vmem>>, vector<1x32xf32>
    %c199 = arith.constant 199 : index
    %c0_8 = arith.constant 0 : index
    %10 = vector.load %arg1[%c199, %c0_8] : memref<200x96xf32, #tpu.memory_space<vmem>>, vector<1x32xf32>
    %c0_9 = arith.constant 0 : index
    %c0_10 = arith.constant 0 : index
    %11 = vector.load %arg1[%c0_9, %c0_10] : memref<200x96xf32, #tpu.memory_space<vmem>>, vector<32x96xf32>
    %cst = arith.constant dense<0.000000e+00> : vector<16x96xf32>
    %12 = tpu.matmul %1, %11, %cst {dimension_numbers = #tpu.dot_dimension_numbers<[1], [0], [0], [1], [0, 0, 1, 1], [], []>} : vector<16x32xf32>, vector<32x96xf32>, vector<16x96xf32> -> vector<16x96xf32>
    %13 = vector.broadcast %3 : vector<1x96xf32> to vector<16x96xf32>
    %14 = arith.addf %12, %13 : vector<16x96xf32>
    %15 = vector.extract_strided_slice %14 {offsets = [0, 0], sizes = [16, 32], strides = [1, 1]} : vector<16x96xf32> to vector<16x32xf32>
    %16 = vector.shape_cast %15 : vector<16x32xf32> to vector<2x8x32xf32>
    %17 = vector.extract_strided_slice %14 {offsets = [0, 32], sizes = [16, 32], strides = [1, 1]} : vector<16x96xf32> to vector<16x32xf32>
    %18 = vector.shape_cast %17 : vector<16x32xf32> to vector<2x8x32xf32>
    %19 = vector.extract_strided_slice %14 {offsets = [0, 64], sizes = [16, 32], strides = [1, 1]} : vector<16x96xf32> to vector<16x32xf32>
    %20 = vector.shape_cast %19 : vector<16x32xf32> to vector<2x8x32xf32>
    %c160 = arith.constant 160 : index
    %c0_11 = arith.constant 0 : index
    %21 = vector.load %arg1[%c160, %c0_11] : memref<200x96xf32, #tpu.memory_space<vmem>>, vector<32x32xf32>
    %22 = vector.shape_cast %16 : vector<2x8x32xf32> to vector<2x1x8x32xf32>
    %23 = vector.shape_cast %22 : vector<2x1x8x32xf32> to vector<2x1x8x32xf32>
    %24 = vector.broadcast %23 : vector<2x1x8x32xf32> to vector<2x4x8x32xf32>
    %25 = vector.shape_cast %24 : vector<2x4x8x32xf32> to vector<2x32x32xf32>
    %26 = vector.shape_cast %21 : vector<32x32xf32> to vector<1x32x32xf32>
    %27 = vector.broadcast %26 : vector<1x32x32xf32> to vector<2x32x32xf32>
    %28 = arith.mulf %25, %27 : vector<2x32x32xf32>
    "tpu.trace_start"() <{level = 10 : i32, message = "brd,bkd->brk"}> : () -> ()
    %cst_12 = arith.constant dense<0.000000e+00> : vector<2x32x8xf32>
    %29 = tpu.matmul %28, %18, %cst_12 {dimension_numbers = #tpu.dot_dimension_numbers<[2], [2], [1], [1], [0, 0, 0, 1, 1, 1], [0], [0]>} : vector<2x32x32xf32>, vector<2x8x32xf32>, vector<2x32x8xf32> -> vector<2x32x8xf32>
    "tpu.trace_stop"() : () -> ()
    %cst_13 = arith.constant 0.353553385 : f32
    %30 = vector.broadcast %cst_13 : f32 to vector<2x32x8xf32>
    %31 = arith.mulf %29, %30 : vector<2x32x8xf32>
    %32 = vector.shape_cast %2 : vector<16x8xf32> to vector<2x1x8x8xf32>
    %33 = vector.shape_cast %32 : vector<2x1x8x8xf32> to vector<2x1x8x8xf32>
    %34 = vector.broadcast %33 : vector<2x1x8x8xf32> to vector<2x4x8x8xf32>
    %35 = vector.shape_cast %34 : vector<2x4x8x8xf32> to vector<2x32x8xf32>
    %36 = arith.addf %31, %35 : vector<2x32x8xf32>
    %cst_14 = arith.constant dense<0xFF800000> : vector<2x32xf32>
    %37 = vector.multi_reduction <maximumf>, %36, %cst_14 [2] : vector<2x32x8xf32> to vector<2x32xf32>
    %38 = vector.shape_cast %37 : vector<2x32xf32> to vector<2x32x1xf32>
    %39 = vector.broadcast %38 : vector<2x32x1xf32> to vector<2x32x8xf32>
    %40 = arith.subf %36, %39 : vector<2x32x8xf32>
    %41 = math.exp %40 : vector<2x32x8xf32>
    %cst_15 = arith.constant dense<0.000000e+00> : vector<2x32xf32>
    %42 = vector.multi_reduction <add>, %41, %cst_15 [2] : vector<2x32x8xf32> to vector<2x32xf32>
    %43 = vector.shape_cast %42 : vector<2x32xf32> to vector<2x32x1xf32>
    %44 = tpu.reciprocal %43 : vector<2x32x1xf32> -> vector<2x32x1xf32>
    %45 = vector.broadcast %44 : vector<2x32x1xf32> to vector<2x32x8xf32>
    %46 = arith.mulf %41, %45 : vector<2x32x8xf32>
    %47 = vector.shape_cast %46 : vector<2x32x8xf32> to vector<8x8x8xf32>
    %c0_16 = arith.constant 0 : index
    %c0_17 = arith.constant 0 : index
    %c0_18 = arith.constant 0 : index
    %48 = vector.load %arg3[%c0_16, %c0_17, %c0_18] : memref<8x8x8xf32, #tpu.memory_space<vmem>>, vector<8x8x8xf32>
    tpu.vector_store %arg3[%c0_16, %c0_17, %c0_18], %47 {strides = array<i32>} : memref<8x8x8xf32, #tpu.memory_space<vmem>>, vector<8x8x8xf32>,
    "tpu.trace_start"() <{level = 10 : i32, message = "brk,bkd->brd"}> : () -> ()
    %cst_19 = arith.constant dense<0.000000e+00> : vector<2x32x32xf32>
    %49 = tpu.matmul %46, %20, %cst_19 {dimension_numbers = #tpu.dot_dimension_numbers<[2], [1], [1], [2], [0, 0, 0, 1, 1, 2], [0], [0]>} : vector<2x32x8xf32>, vector<2x8x32xf32>, vector<2x32x32xf32> -> vector<2x32x32xf32>
    "tpu.trace_stop"() : () -> ()
    %50 = vector.shape_cast %21 : vector<32x32xf32> to vector<1x32x32xf32>
    %51 = vector.broadcast %50 : vector<1x32x32xf32> to vector<2x32x32xf32>
    %52 = arith.mulf %49, %51 : vector<2x32x32xf32>
    %53 = vector.shape_cast %52 : vector<2x32x32xf32> to vector<2x4x8x32xf32>
    %54 = vector.extract_strided_slice %53 {offsets = [0, 0, 0, 0], sizes = [2, 1, 8, 32], strides = [1, 1, 1, 1]} : vector<2x4x8x32xf32> to vector<2x1x8x32xf32>
    %55 = vector.shape_cast %54 : vector<2x1x8x32xf32> to vector<2x8x32xf32>
    %cst_20 = arith.constant 0.000000e+00 : f32
    %56 = vector.broadcast %cst_20 : f32 to vector<2x8x32xf32>
    %57 = arith.addf %56, %55 : vector<2x8x32xf32>
    %58 = vector.extract_strided_slice %53 {offsets = [0, 1, 0, 0], sizes = [2, 1, 8, 32], strides = [1, 1, 1, 1]} : vector<2x4x8x32xf32> to vector<2x1x8x32xf32>
    %59 = vector.shape_cast %58 : vector<2x1x8x32xf32> to vector<2x8x32xf32>
    %60 = arith.addf %57, %59 : vector<2x8x32xf32>
    %61 = vector.extract_strided_slice %53 {offsets = [0, 2, 0, 0], sizes = [2, 1, 8, 32], strides = [1, 1, 1, 1]} : vector<2x4x8x32xf32> to vector<2x1x8x32xf32>
    %62 = vector.shape_cast %61 : vector<2x1x8x32xf32> to vector<2x8x32xf32>
    %63 = arith.addf %60, %62 : vector<2x8x32xf32>
    %64 = vector.extract_strided_slice %53 {offsets = [0, 3, 0, 0], sizes = [2, 1, 8, 32], strides = [1, 1, 1, 1]} : vector<2x4x8x32xf32> to vector<2x1x8x32xf32>
    %65 = vector.shape_cast %64 : vector<2x1x8x32xf32> to vector<2x8x32xf32>
    %66 = arith.addf %63, %65 : vector<2x8x32xf32>
    %67 = vector.shape_cast %66 : vector<2x8x32xf32> to vector<16x32xf32>
    %c32 = arith.constant 32 : index
    %c0_21 = arith.constant 0 : index
    %68 = vector.load %arg1[%c32, %c0_21] : memref<200x96xf32, #tpu.memory_space<vmem>>, vector<32x32xf32>
    %cst_22 = arith.constant dense<0.000000e+00> : vector<16x32xf32>
    %69 = tpu.matmul %67, %68, %cst_22 {dimension_numbers = #tpu.dot_dimension_numbers<[1], [0], [0], [1], [0, 0, 1, 1], [], []>} : vector<16x32xf32>, vector<32x32xf32>, vector<16x32xf32> -> vector<16x32xf32>
    %70 = vector.broadcast %4 : vector<1x32xf32> to vector<16x32xf32>
    %71 = arith.addf %69, %70 : vector<16x32xf32>
    %72 = arith.addf %1, %71 : vector<16x32xf32>
    %cst_23 = arith.constant dense<0.000000e+00> : vector<16xf32>
    %73 = vector.multi_reduction <add>, %72, %cst_23 [1] : vector<16x32xf32> to vector<16xf32>
    %74 = vector.shape_cast %73 : vector<16xf32> to vector<16x1xf32>
    %cst_24 = arith.constant 3.200000e+01 : f32
    %75 = vector.broadcast %cst_24 : f32 to vector<16x1xf32>
    %76 = arith.divf %74, %75 : vector<16x1xf32>
    %77 = vector.broadcast %76 : vector<16x1xf32> to vector<16x32xf32>
    %78 = arith.subf %72, %77 : vector<16x32xf32>
    %79 = arith.mulf %78, %78 : vector<16x32xf32>
    %cst_25 = arith.constant dense<0.000000e+00> : vector<16xf32>
    %80 = vector.multi_reduction <add>, %79, %cst_25 [1] : vector<16x32xf32> to vector<16xf32>
    %81 = vector.shape_cast %80 : vector<16xf32> to vector<16x1xf32>
    %cst_26 = arith.constant 3.200000e+01 : f32
    %82 = vector.broadcast %cst_26 : f32 to vector<16x1xf32>
    %83 = arith.divf %81, %82 : vector<16x1xf32>
    %84 = vector.broadcast %76 : vector<16x1xf32> to vector<16x32xf32>
    %85 = arith.subf %72, %84 : vector<16x32xf32>
    %cst_27 = arith.constant 9.99999997E-7 : f32
    %86 = vector.broadcast %cst_27 : f32 to vector<16x1xf32>
    %87 = arith.addf %83, %86 : vector<16x1xf32>
    %88 = math.rsqrt %87 : vector<16x1xf32>
    %89 = vector.broadcast %88 : vector<16x1xf32> to vector<16x32xf32>
    %90 = arith.mulf %85, %89 : vector<16x32xf32>
    %91 = vector.broadcast %5 : vector<1x32xf32> to vector<16x32xf32>
    %92 = arith.mulf %90, %91 : vector<16x32xf32>
    %93 = vector.broadcast %6 : vector<1x32xf32> to vector<16x32xf32>
    %94 = arith.addf %92, %93 : vector<16x32xf32>
    %c64 = arith.constant 64 : index
    %c0_28 = arith.constant 0 : index
    %95 = vector.load %arg1[%c64, %c0_28] : memref<200x96xf32, #tpu.memory_space<vmem>>, vector<32x64xf32>
    %c96 = arith.constant 96 : index
    %c0_29 = arith.constant 0 : index
    %96 = vector.load %arg1[%c96, %c0_29] : memref<200x96xf32, #tpu.memory_space<vmem>>, vector<64x32xf32>
    %cst_30 = arith.constant dense<0.000000e+00> : vector<16x64xf32>
    %97 = tpu.matmul %94, %95, %cst_30 {dimension_numbers = #tpu.dot_dimension_numbers<[1], [0], [0], [1], [0, 0, 1, 1], [], []>} : vector<16x32xf32>, vector<32x64xf32>, vector<16x64xf32> -> vector<16x64xf32>
    %98 = vector.broadcast %7 : vector<1x64xf32> to vector<16x64xf32>
    %99 = arith.addf %97, %98 : vector<16x64xf32>
    %cst_31 = arith.constant 0.000000e+00 : f32
    %100 = vector.broadcast %cst_31 : f32 to vector<16x64xf32>
    %101 = arith.maximumf %99, %100 : vector<16x64xf32>
    %cst_32 = arith.constant dense<0.000000e+00> : vector<16x32xf32>
    %102 = tpu.matmul %101, %96, %cst_32 {dimension_numbers = #tpu.dot_dimension_numbers<[1], [0], [0], [1], [0, 0, 1, 1], [], []>} : vector<16x64xf32>, vector<64x32xf32>, vector<16x32xf32> -> vector<16x32xf32>
    %103 = vector.broadcast %8 : vector<1x32xf32> to vector<16x32xf32>
    %104 = arith.addf %102, %103 : vector<16x32xf32>
    %105 = arith.addf %104, %94 : vector<16x32xf32>
    %cst_33 = arith.constant dense<0.000000e+00> : vector<16xf32>
    %106 = vector.multi_reduction <add>, %105, %cst_33 [1] : vector<16x32xf32> to vector<16xf32>
    %107 = vector.shape_cast %106 : vector<16xf32> to vector<16x1xf32>
    %cst_34 = arith.constant 3.200000e+01 : f32
    %108 = vector.broadcast %cst_34 : f32 to vector<16x1xf32>
    %109 = arith.divf %107, %108 : vector<16x1xf32>
    %110 = vector.broadcast %109 : vector<16x1xf32> to vector<16x32xf32>
    %111 = arith.subf %105, %110 : vector<16x32xf32>
    %112 = arith.mulf %111, %111 : vector<16x32xf32>
    %cst_35 = arith.constant dense<0.000000e+00> : vector<16xf32>
    %113 = vector.multi_reduction <add>, %112, %cst_35 [1] : vector<16x32xf32> to vector<16xf32>
    %114 = vector.shape_cast %113 : vector<16xf32> to vector<16x1xf32>
    %cst_36 = arith.constant 3.200000e+01 : f32
    %115 = vector.broadcast %cst_36 : f32 to vector<16x1xf32>
    %116 = arith.divf %114, %115 : vector<16x1xf32>
    %117 = vector.broadcast %109 : vector<16x1xf32> to vector<16x32xf32>
    %118 = arith.subf %105, %117 : vector<16x32xf32>
    %cst_37 = arith.constant 9.99999997E-7 : f32
    %119 = vector.broadcast %cst_37 : f32 to vector<16x1xf32>
    %120 = arith.addf %116, %119 : vector<16x1xf32>
    %121 = math.rsqrt %120 : vector<16x1xf32>
    %122 = vector.broadcast %121 : vector<16x1xf32> to vector<16x32xf32>
    %123 = arith.mulf %118, %122 : vector<16x32xf32>
    %124 = vector.broadcast %9 : vector<1x32xf32> to vector<16x32xf32>
    %125 = arith.mulf %123, %124 : vector<16x32xf32>
    %126 = vector.broadcast %10 : vector<1x32xf32> to vector<16x32xf32>
    %127 = arith.addf %125, %126 : vector<16x32xf32>
    %c0_38 = arith.constant 0 : index
    %c0_39 = arith.constant 0 : index
    %128 = vector.load %arg2[%c0_38, %c0_39] : memref<16x32xf32, #tpu.memory_space<vmem>>, vector<16x32xf32>
    tpu.vector_store %arg2[%c0_38, %c0_39], %127 {strides = array<i32>} : memref<16x32xf32, #tpu.memory_space<vmem>>, vector<16x32xf32>,
    return
  }
}

</mosaic_0001>

<bundles_post_ra>
// kernel: tpu_custom_call.1
= control target key start
LH: loop header
LB: loop body
LE: loop exit
PB: predicated region body
PF: predicated region fallthrough
CT: control target
= control target key end

     0   :  { %9 = vsyncpa [#allocation3], 0  ;;  %vm33_vm0 = vcmask 261120   ;;  %s1627_s0 = inlined_call_operand.vmem [shape: f32[16,40], index: 0, kind: input, shape index: {}]   ;;  %s1628_s1 = inlined_call_operand.vmem [shape: f32[200,96], index: 1, kind: input, shape index: {}]   ;;  %s1629_s2 = inlined_call_operand.hbm [shape: f32[16,32], index: 2, kind: output, shape index: {0}]   ;;  %s1630_s3 = inlined_call_operand.hbm [shape: f32[8,8,8], index: 3, kind: output, shape index: {1}]  }
   0x1   :  { %v25_v0 = vld [vmem:[%s1628_s1] sm:$0xff]  ;;  %v26_v1 = vld [vmem:[%s1628_s1 + $0x8] sm:$0xff]  ;;  %v27_v2 = vld [vmem:[%s1628_s1 + $0x10] sm:$0xff] }
   0x2   :  { %v1221_v3 = vpack.c.bf16 %v26_v1, %v25_v0  ;;  %v28_v4 = vld [vmem:[%s1628_s1 + $0x18] sm:$0xff]  ;;  %v1398_v5 = vld [vmem:[%s1627_s0] sm:$0xff] }
   0x3   :  { %v1225_v6 = vpack.c.bf16 %v28_v4, %v27_v2  ;;  %1145 = vmatprep.mubr.msk.f32.mxu0 %vm33_vm0, %v1398_v5 }
   0x4   :  { %10 = vsyncpa [#allocation5], 0  ;;  %1222 = vmatprep.subr.bf16.mxu0 %v1221_v3  ;;  %v1405_v7 = vld [vmem:[%s1627_s0 + $0x8] sm:$0xff]  ;;  %s1357_s24 = smov 96   ;;  %v1055_v8 = vld [vmem:[%s1628_s1 + $0xc0] ss:$0 sm:$0xff] }
   0x5   :  { %1224 = vmatpush3.bf16.msra.mxu0 %v1221_v3  ;;  %339 = vrot.lane.b32.xlu1 %v1398_v5, %s1357_s24  ;;  %v1417_v11 = vld [vmem:[%s1628_s1 + $0xa0] sm:$0xff]  ;;  %v1422_v12 = vld [vmem:[%s1628_s1 + $0xb0] sm:$0xff]  ;;  %v1439_v18 = vld [vmem:[%s1628_s1 + $0xa8] sm:$0xff]  ;;  %vm353_vm1 = vcmask 64512   ;;  %s1358_s7 = smov 64   ;;  %vm899_vm2 = vcmask 523264  }
   0x6   :  { %1226 = vmatprep.subr.bf16.mxu0 %v1225_v6  ;;  %v1444_v19 = vld [vmem:[%s1628_s1 + $0xb8] sm:$0xff]  ;;  %s1359_s22 = smov [#allocation4]  }
   0x7   :  { %s1040_s23 = sshll.u32 %s1359_s22, 4  ;;  %s1041_s23 = int_to_ptr.vmem [resolvable:$true] %s1040_s23 }
   0x8   :  { %p1314_p1 = scmp.lt.s32.totalorder %s1041_s23, %s1041_s23 }
   0x9   :  { %1228 = vmatpush3.bf16.msra.mxu0 %v1225_v6  ;;  %341 = vrot.lane.b32.xlu1 %v1405_v7, %s1357_s24 }
   0xc   :  { %1146 = vmatmul.mubr.msk.f32.vlgmr.msra.gmra.mrb[0].mxu0 %vm33_vm0, %v1405_v7 }
  0x77   :  { %v340_v27 = vpop.permute.xlu1 %339 }
  0x7b   :  { %v342_v38 = vpop.permute.xlu1 %341 }
  0xdf   :  { %v1147_v9 = vpop.f32.mrb[0].mxu0 }
  0xe0   :  { %v106_v10 = vpop.f32.mrb[1].mxu0  ;;  %v1431_v16 = vadd.f32 %v1147_v9, %v1055_v8 }
  0xe1   :  { %v1424_v13 = vadd.f32 %v1055_v8, %v106_v10 }
  0xe2   :  { %v123_v23 = vmul.f32 %v1417_v11, %v1431_v16  ;;  %v124_v24 = vmul.f32 %v1439_v18, %v1431_v16  ;;  %v125_v25 = vmul.f32 %v1422_v12, %v1431_v16  ;;  %v126_v26 = vmul.f32 %v1444_v19, %v1431_v16 }
  0xe3   :  { %128 = vrot.lane.b32.xlu0 %v1424_v13, %s1357_s24  ;;  %v119_v14 = vmul.f32 %v1417_v11, %v1424_v13  ;;  %v121_v15 = vmul.f32 %v1422_v12, %v1424_v13  ;;  %v120_v20 = vmul.f32 %v1439_v18, %v1424_v13  ;;  %v122_v21 = vmul.f32 %v1444_v19, %v1424_v13 }
  0xe5   :  { %1150 = vmatprep.mubr.msk.f32.mxu0 %vm33_vm0, %v119_v14  ;;  %1153 = vmatprep.mubr.msk.f32.mxu1 %vm33_vm0, %v121_v15 }
  0xe7   :  { %230 = vrot.lane.b32.xlu0 %v1431_v16, %s1357_s24  ;;  %s1309_s24 = scalar_lea.vmem %s1041_s23, 1024 }
  0xe8   :  { %p1310_p0 = scmp.ne.s32.totalorder %s1041_s23, %s1309_s24  ;;  %p1315_p2 = scmp.lt.s32.totalorder %s1309_s24, %s1309_s24 }
  0xea   :  { %p1316_p3 = por %p1315_p2, %p1314_p1 }
  0xec   :  { %p1317_p4 = pnand %p1316_p3, %p1310_p0 }
 0x155   :  { %v129_v17 = vpop.permute.xlu0 %128 }
 0x156   :  { %1148 = vmatprep.subr.msk.mxu0 %vm33_vm0, %v129_v17  ;;  %1261 = vmatprep.subr.msk.mxu1 %vm33_vm0, %v129_v17 }
 0x157   :  { %1149 = vmatpush3.xpose.msk.msra.mxu0 %vm33_vm0, %v129_v17  ;;  %1262 = vmatpush3.xpose.msk.msra.mxu1 %vm33_vm0, %v129_v17 }
 0x159   :  { %v231_v22 = vpop.permute.xlu0 %230 }
 0x15a   :  { %1151 = vmatmul.mubr.msk.f32.vlgmr.msra.gmra.mrb[2].mxu0 %vm33_vm0, %v120_v20  ;;  %1154 = vmatmul.mubr.msk.f32.vlgmr.msra.gmra.mrb[0].mxu1 %vm33_vm0, %v122_v21 }
 0x15b   :  { %1156 = vmatprep.subr.msk.mxu0 %vm33_vm0, %v231_v22  ;;  %1158 = vmatprep.mubr.msk.f32.mxu0 %vm33_vm0, %v123_v23 }
 0x15c   :  { %1157 = vmatpush3.xpose.msk.msra.mxu0 %vm33_vm0, %v231_v22 }
 0x15f   :  { %1159 = vmatmul.mubr.msk.f32.vlgmr.msra.gmra.mrb[4].mxu0 %vm33_vm0, %v124_v24 }
 0x160   :  { %1161 = vmatprep.mubr.msk.f32.mxu0 %vm33_vm0, %v125_v25 }
 0x163   :  { %1162 = vmatmul.mubr.msk.f32.gmra.mrb[6].mxu0 %vm33_vm0, %v126_v26 }
 0x22d   :  { %v1152_v28 = vpop.f32.mrb[2].mxu0  ;;  %v1155_v29 = vpop.f32.mrb[0].mxu1 }
 0x22e   :  { %v332_v30 = vmul.f32 0.35355338, %v1152_v28  ;;  %v210_v31 = vpop.f32.mrb[3].mxu0  ;;  %v220_v32 = vpop.f32.mrb[1].mxu1  ;;  %v334_v48 = vmul.f32 0.35355338, %v1155_v29 }
 0x22f   :  { %v331_v33 = vmul.f32 0.35355338, %v210_v31  ;;  %v333_v34 = vmul.f32 0.35355338, %v220_v32 }
 0x230   :  { %v346_v35 = vadd.f32 %v340_v27, %v332_v30  ;;  %v348_v56 = vadd.f32 %v340_v27, %v334_v48 }
 0x231   :  { %v345_v36 = vadd.f32 %v340_v27, %v331_v33  ;;  %v347_v40 = vadd.f32 %v340_v27, %v333_v34 }
 0x232   :  { %v1160_v37 = vpop.f32.mrb[4].mxu0  ;;  %v357_v39 = vsel %vm353_vm1, %v346_v35, -inf  ;;  %v363_v58 = vsel %vm353_vm1, %v348_v56, -inf }
 0x233   :  { %v336_v41 = vmul.f32 0.35355338, %v1160_v37  ;;  %v312_v42 = vpop.f32.mrb[5].mxu0  ;;  %358 = vmax.xlane.f32.xlu1 %v357_v39  ;;  %v354_v43 = vsel %vm353_vm1, %v345_v36, -inf  ;;  %v360_v47 = vsel %vm353_vm1, %v347_v40, -inf }
 0x234   :  { %v335_v44 = vmul.f32 0.35355338, %v312_v42  ;;  %355 = vmax.xlane.f32.xlu0 %v354_v43 }
 0x235   :  { %v350_v45 = vadd.f32 %v342_v38, %v336_v41 }
 0x236   :  { %v1163_v46 = vpop.f32.mrb[6].mxu0  ;;  %v349_v51 = vadd.f32 %v342_v38, %v335_v44 }
 0x237   :  { %v322_v49 = vpop.f32.mrb[7].mxu0  ;;  %361 = vmax.xlane.f32.xlu1 %v360_v47  ;;  %v369_v50 = vsel %vm353_vm1, %v350_v45, -inf  ;;  %v338_v54 = vmul.f32 0.35355338, %v1163_v46 }
 0x238   :  { %v337_v52 = vmul.f32 0.35355338, %v322_v49  ;;  %370 = vmax.xlane.f32.xlu0 %v369_v50  ;;  %v366_v55 = vsel %vm353_vm1, %v349_v51, -inf }
 0x239   :  { %v352_v59 = vadd.f32 %v342_v38, %v338_v54 }
 0x23a   :  { %v351_v53 = vadd.f32 %v342_v38, %v337_v52 }
 0x23b   :  { %v375_v60 = vsel %vm353_vm1, %v352_v59, -inf }
 0x23c   :  { %367 = vmax.xlane.f32.xlu0 %v366_v55  ;;  %v372_v57 = vsel %vm353_vm1, %v351_v53, -inf }
 0x23d   :  { %373 = vmax.xlane.f32.xlu1 %v372_v57 }
 0x240   :  { %364 = vmax.xlane.f32.xlu0 %v363_v58 }
 0x244   :  { %376 = vmax.xlane.f32.xlu0 %v375_v60 }
 0x2c0   :  { %v359_v61 = vpop.xlane.xlu1 %358 }
 0x2c1   :  { %v379_v62 = vsub.f32 %v346_v35, %v359_v61  ;;  %v356_v63 = vpop.xlane.xlu0 %355 }
 0x2c2   :  { %v378_v0 = vsub.f32 %v345_v36, %v356_v63 }
 0x2c3   :  { %v388_v1 = vmul.f32 1.442695, %v379_v62 }
 0x2c4   :  { %v386_v2 = vmul.f32 1.442695, %v378_v0  ;;  %v362_v3 = vpop.xlane.xlu1 %361 }
 0x2c5   :  { %1269 = vpow2.f32 %v388_v1  ;;  %v380_v4 = vsub.f32 %v347_v40, %v362_v3  ;;  %v371_v6 = vpop.xlane.xlu0 %370 }
 0x2c6   :  { %1271 = vpow2.f32 %v386_v2  ;;  %v383_v17 = vsub.f32 %v350_v45, %v371_v6  ;;  %v666_v6 = vld [vmem:[%s1628_s1 + $0x20] sm:$0xff] }
 0x2c7   :  { %v390_v8 = vmul.f32 1.442695, %v380_v4 }
 0x2c8   :  { %v396_v26 = vmul.f32 1.442695, %v383_v17 }
 0x2c9   :  { %1273 = vpow2.f32 %v390_v8  ;;  %v368_v9 = vpop.xlane.xlu0 %367  ;;  %v667_v8 = vld [vmem:[%s1628_s1 + $0x28] sm:$0xff] }
 0x2ca   :  { %v382_v10 = vsub.f32 %v349_v51, %v368_v9  ;;  %v374_v14 = vpop.xlane.xlu1 %373  ;;  %v1229_v9 = vpack.c.bf16 %v667_v8, %v666_v6 }
 0x2cb   :  { %v384_v15 = vsub.f32 %v351_v53, %v374_v14  ;;  %v669_v14 = vld [vmem:[%s1628_s1 + $0x38] sm:$0xff] }
 0x2cc   :  { %v394_v20 = vmul.f32 1.442695, %v382_v10  ;;  %v668_v10 = vld [vmem:[%s1628_s1 + $0x30] sm:$0xff] }
 0x2cd   :  { %v398_v21 = vmul.f32 1.442695, %v384_v15  ;;  %v365_v22 = vpop.xlane.xlu0 %364  ;;  %v1233_v15 = vpack.c.bf16 %v669_v14, %v668_v10 }
 0x2ce   :  { %1275 = vpow2.f32 %v394_v20  ;;  %v381_v23 = vsub.f32 %v348_v56, %v365_v22 }
 0x2cf   :  { %v1270_v24 = vpop.eup %1269  ;;  %1277 = vpow2.f32 %v398_v21 }
 0x2d0   :  { %v1272_v25 = vpop.eup %1271  ;;  %v392_v27 = vmul.f32 1.442695, %v381_v23  ;;  %v405_v28 = vsel %vm353_vm1, %v1270_v24, 0.0 }
 0x2d1   :  { %406 = vadd.xlane.f32.xlu0 %v405_v28  ;;  %v377_v29 = vpop.xlane.xlu0 %376  ;;  %v402_v30 = vsel %vm353_vm1, %v1272_v25, 0.0 }
 0x2d2   :  { %1279 = vpow2.f32 %v392_v27  ;;  %v385_v31 = vsub.f32 %v352_v59, %v377_v29  ;;  %403 = vadd.xlane.f32.xlu1 %v402_v30 }
 0x2d3   :  { %v1274_v32 = vpop.eup %1273  ;;  %1281 = vpow2.f32 %v396_v26 }
 0x2d4   :  { %v400_v33 = vmul.f32 1.442695, %v385_v31  ;;  %v408_v34 = vsel %vm353_vm1, %v1274_v32, 0.0 }
 0x2d6   :  { %409 = vadd.xlane.f32.xlu1 %v408_v34  ;;  %1283 = vpow2.f32 %v400_v33 }
 0x2d8   :  { %v1276_v35 = vpop.eup %1275 }
 0x2d9   :  { %v414_v36 = vsel %vm353_vm1, %v1276_v35, 0.0  ;;  %v1278_v37 = vpop.eup %1277 }
 0x2da   :  { %415 = vadd.xlane.f32.xlu1 %v414_v36  ;;  %v420_v40 = vsel %vm353_vm1, %v1278_v37, 0.0 }
 0x2dc   :  { %v1280_v38 = vpop.eup %1279 }
 0x2dd   :  { %v411_v39 = vsel %vm353_vm1, %v1280_v38, 0.0  ;;  %v1282_v41 = vpop.eup %1281 }
 0x2de   :  { %412 = vadd.xlane.f32.xlu0 %v411_v39  ;;  %421 = vadd.xlane.f32.xlu1 %v420_v40  ;;  %v417_v42 = vsel %vm353_vm1, %v1282_v41, 0.0 }
 0x2e0   :  { %v1284_v43 = vpop.eup %1283 }
 0x2e1   :  { %v423_v44 = vsel %vm353_vm1, %v1284_v43, 0.0 }
 0x2e2   :  { %418 = vadd.xlane.f32.xlu0 %v417_v42 }
 0x2e6   :  { %424 = vadd.xlane.f32.xlu0 %v423_v44 }
 0x2ef   :  { %450 = vrot.lane.b32.xlu1 %v1424_v13, %s1358_s7 }
 0x2fc   :  { %550 = vrot.lane.b32.xlu0 %v1431_v16, %s1358_s7 }
 0x35e   :  { %v407_v45 = vpop.xlane.xlu0 %406 }
 0x35f   :  { %1285 = vrcp.f32 %v407_v45  ;;  %v404_v46 = vpop.xlane.xlu1 %403 }
 0x360   :  { %1287 = vrcp.f32 %v404_v46 }
 0x363   :  { %v410_v47 = vpop.xlane.xlu1 %409 }
 0x364   :  { %1289 = vrcp.f32 %v410_v47 }
 0x367   :  { %v416_v48 = vpop.xlane.xlu1 %415 }
 0x368   :  { %1291 = vrcp.f32 %v416_v48 }
 0x369   :  { %v1286_v49 = vpop.eup %1285 }
 0x36a   :  { %v1288_v50 = vpop.eup %1287  ;;  %v435_v51 = vmul.f32 %v1286_v49, %v1270_v24 }
 0x36b   :  { %v413_v52 = vpop.xlane.xlu0 %412  ;;  %v422_v53 = vpop.xlane.xlu1 %421  ;;  %v434_v54 = vmul.f32 %v1288_v50, %v1272_v25 }
 0x36c   :  { %443 = vst.msk [vmem:[#allocation4 + $0x8] sm:$0xff] %vm353_vm1, %v435_v51  ;;  %1293 = vrcp.f32 %v413_v52 }
 0x36d   :  { %1295 = vrcp.f32 %v422_v53  ;;  %442 = vst.msk [vmem:[#allocation4] sm:$0xff] %vm353_vm1, %v434_v54  ;;  %1166 = vmatprep.mubr.msk.f32.mxu1 %vm353_vm1, %v434_v54 }
 0x36e   :  { %v1290_v13 = vpop.eup %1289 }
 0x36f   :  { %v419_v16 = vpop.xlane.xlu0 %418  ;;  %v451_v55 = vpop.permute.xlu1 %450  ;;  %v436_v56 = vmul.f32 %v1290_v13, %v1274_v32  ;;  %v797_v13 = vld [vmem:[%s1628_s1 + $0x48] sm:$0xff] }
 0x370   :  { %1297 = vrcp.f32 %v419_v16  ;;  %1164 = vmatprep.subr.mxu1 %v451_v55 }
 0x371   :  { %1165 = vmatpush3.msra.mxu1 %v451_v55  ;;  %444 = vst.msk [vmem:[#allocation4 + $0x10] sm:$0xff] %vm353_vm1, %v436_v56  ;;  %v798_v55 = vld [vmem:[%s1628_s1 + $0x50] sm:$0xff] }
 0x372   :  { %v1292_v57 = vpop.eup %1291  ;;  %1167 = vmatmul.mubr.msk.f32.vlgmr.msra.gmra.mrb[2].mxu1 %vm353_vm1, %v435_v51  ;;  %1230 = vmatprep.subr.bf16.mxu1 %v1229_v9 }
 0x373   :  { %v425_v58 = vpop.xlane.xlu0 %424  ;;  %1169 = vmatprep.mubr.msk.f32.mxu1 %vm353_vm1, %v436_v56  ;;  %v438_v59 = vmul.f32 %v1292_v57, %v1276_v35  ;;  %1232 = vmatpush3.bf16.msra.mxu1 %v1229_v9  ;;  %v799_v56 = vld [vmem:[%s1628_s1 + $0x58] sm:$0xff] }
 0x374   :  { %1299 = vrcp.f32 %v425_v58  ;;  %1234 = vmatprep.subr.bf16.mxu1 %v1233_v15  ;;  %v1241_v57 = vpack.c.bf16 %v799_v56, %v798_v55  ;;  %v800_v58 = vld [vmem:[%s1628_s1 + $0x60] sm:$0xff] }
 0x375   :  { %446 = vst.msk [vmem:[#allocation4 + $0x20] sm:$0xff] %vm353_vm1, %v438_v59  ;;  %1174 = vmatprep.mubr.msk.f32.mxu0 %vm353_vm1, %v438_v59  ;;  %v801_v59 = vld [vmem:[%s1628_s1 + $0x68] sm:$0xff] }
 0x376   :  { %v1294_v60 = vpop.eup %1293 }
 0x377   :  { %v1296_v61 = vpop.eup %1295  ;;  %v551_v62 = vpop.permute.xlu0 %550  ;;  %v437_v63 = vmul.f32 %v1294_v60, %v1280_v38  ;;  %1236 = vmatpush3.bf16.msra.mxu1 %v1233_v15  ;;  %v802_v60 = vld [vmem:[%s1628_s1 + $0x70] sm:$0xff]  ;;  %v1079_v15 = vld [vmem:[%s1628_s1 + $0xc2] ss:$0 sm:$0xff] }
 0x378   :  { %1172 = vmatprep.subr.mxu0 %v551_v62  ;;  %v440_v0 = vmul.f32 %v1296_v61, %v1278_v37  ;;  %v1245_v61 = vpack.c.bf16 %v801_v59, %v800_v58 }
 0x379   :  { %445 = vst.msk [vmem:[#allocation4 + $0x18] sm:$0xff] %vm353_vm1, %v437_v63  ;;  %1170 = vmatmul.mubr.msk.f32.gmra.mrb[4].mxu1 %vm353_vm1, %v437_v63  ;;  %1173 = vmatpush3.msra.mxu0 %v551_v62  ;;  %v803_v62 = vld [vmem:[%s1628_s1 + $0x78] sm:$0xff] }
 0x37a   :  { %v1298_v1 = vpop.eup %1297  ;;  %448 = vst.msk [vmem:[#allocation4 + $0x30] sm:$0xff] %vm353_vm1, %v440_v0  ;;  %v1249_v63 = vpack.c.bf16 %v803_v62, %v802_v60  ;;  %1246 = vmatprep.subr.bf16.mxu1 %v1245_v61 }
 0x37b   :  { %v439_v2 = vmul.f32 %v1298_v1, %v1282_v41  ;;  %v805_v1 = vld [vmem:[%s1628_s1 + $0x88] sm:$0xff] }
 0x37d   :  { %447 = vst.msk [vmem:[#allocation4 + $0x28] sm:$0xff] %vm353_vm1, %v439_v2  ;;  %1175 = vmatmul.mubr.msk.f32.vlgmr.msra.gmra.mrb[8].mxu0 %vm353_vm1, %v439_v2 }
 0x37e   :  { %v1300_v3 = vpop.eup %1299  ;;  %1177 = vmatprep.mubr.msk.f32.mxu0 %vm353_vm1, %v440_v0  ;;  %v804_v0 = vld [vmem:[%s1628_s1 + $0x80] sm:$0xff] }
 0x37f   :  { %v441_v4 = vmul.f32 %v1300_v3, %v1284_v43  ;;  %v1253_v2 = vpack.c.bf16 %v805_v1, %v804_v0 }
 0x381   :  { %449 = vst.msk [vmem:[#allocation4 + $0x38] sm:$0xff] %vm353_vm1, %v441_v4  ;;  %1178 = vmatmul.mubr.msk.f32.gmra.mrb[10].mxu0 %vm353_vm1, %v441_v4 }
 0x445   :  { %v1168_v17 = vpop.f32.mrb[2].mxu1 }
 0x446   :  { %v651_v20 = vmul.f32 %v1168_v17, %v1439_v18  ;;  %v531_v21 = vpop.f32.mrb[3].mxu1 }
 0x447   :  { %v650_v22 = vmul.f32 %v531_v21, %v1417_v11 }
 0x449   :  { %v660_v23 = vadd.f32 %v651_v20, %v650_v22  ;;  %v1080_v22 = vld [vmem:[%s1628_s1 + $0xc3] ss:$0 sm:$0xff] }
 0x44c   :  { %v1171_v24 = vpop.f32.mrb[4].mxu1 }
 0x44d   :  { %v541_v25 = vpop.f32.mrb[5].mxu1  ;;  %v653_v27 = vmul.f32 %v1171_v24, %v1444_v19 }
 0x44e   :  { %v652_v26 = vmul.f32 %v541_v25, %v1422_v12 }
 0x450   :  { %v662_v28 = vadd.f32 %v660_v23, %v652_v26  ;;  %v1176_v29 = vpop.f32.mrb[8].mxu0 }
 0x451   :  { %v655_v30 = vmul.f32 %v1176_v29, %v1439_v18  ;;  %v631_v31 = vpop.f32.mrb[9].mxu0  ;;  %v1076_v18 = vld [vmem:[%s1628_s1 + $0xc1] ss:$0 sm:$0xff] }
 0x452   :  { %v664_v32 = vadd.f32 %v662_v28, %v653_v27  ;;  %v654_v33 = vmul.f32 %v631_v31, %v1417_v11  ;;  %v806_v27 = vld [vmem:[%s1628_s1 + $0x90] sm:$0xff]  ;;  %v807_v28 = vld [vmem:[%s1628_s1 + $0x98] sm:$0xff] }
 0x453   :  { %v1257_v29 = vpack.c.bf16 %v807_v28, %v806_v27 }
 0x454   :  { %v661_v34 = vadd.f32 %v655_v30, %v654_v33  ;;  %v1179_v35 = vpop.f32.mrb[10].mxu0  ;;  %1188 = vmatprep.mubr.msk.f32.mxu1 %vm33_vm0, %v664_v32  ;;  %v1081_v30 = vld [vmem:[%s1628_s1 + $0xc4] ss:$0 sm:$0xff] }
 0x455   :  { %v641_v36 = vpop.f32.mrb[11].mxu0  ;;  %v657_v38 = vmul.f32 %v1179_v35, %v1444_v19 }
 0x456   :  { %v656_v37 = vmul.f32 %v641_v36, %v1422_v12 }
 0x458   :  { %v663_v39 = vadd.f32 %v661_v34, %v656_v37  ;;  %v1084_v37 = vld [vmem:[%s1628_s1 + $0xc5] ss:$0 sm:$0xff] }
 0x45a   :  { %v665_v40 = vadd.f32 %v663_v39, %v657_v38 }
 0x45c   :  { %1189 = vmatmul.mubr.msk.f32.vlgmr.msra.gmra.mrb[6].mxu1 %vm33_vm0, %v665_v40 }
 0x45d   :  { %1248 = vmatpush3.bf16.msra.mxu1 %v1245_v61 }
 0x45e   :  { %1250 = vmatprep.subr.bf16.mxu1 %v1249_v63 }
 0x461   :  { %1252 = vmatpush3.bf16.msra.mxu1 %v1249_v63 }
 0x462   :  { %1254 = vmatprep.subr.bf16.mxu1 %v1253_v2 }
 0x465   :  { %1256 = vmatpush3.bf16.msra.mxu1 %v1253_v2 }
 0x466   :  { %1258 = vmatprep.subr.bf16.mxu1 %v1257_v29 }
 0x469   :  { %1260 = vmatpush3.bf16.msra.mxu1 %v1257_v29 }
 0x52f   :  { %v1190_v41 = vpop.f32.mrb[6].mxu1 }
 0x530   :  { %v752_v42 = vadd.f32 %v1190_v41, %v1076_v18  ;;  %v746_v11 = vpop.f32.mrb[7].mxu1 }
 0x531   :  { %v747_v43 = vadd.f32 %v1076_v18, %v746_v11 }
 0x532   :  { %v756_v44 = vadd.f32 %v752_v42, %v1405_v7 }
 0x533   :  { %v755_v45 = vadd.f32 %v747_v43, %v1398_v5  ;;  %v796_v5 = vld [vmem:[%s1628_s1 + $0x40] sm:$0xff] }
 0x534   :  { %v760_v12 = vsel %vm33_vm0, %v756_v44, 0.0  ;;  %v1237_v16 = vpack.c.bf16 %v797_v13, %v796_v5 }
 0x535   :  { %761 = vadd.xlane.f32.xlu0 %v760_v12  ;;  %v757_v19 = vsel %vm33_vm0, %v755_v45, 0.0 }
 0x536   :  { %758 = vadd.xlane.f32.xlu1 %v757_v19  ;;  %1238 = vmatprep.subr.bf16.mxu0 %v1237_v16 }
 0x537   :  { %1240 = vmatpush3.bf16.msra.mxu0 %v1237_v16 }
 0x538   :  { %1242 = vmatprep.subr.bf16.mxu0 %v1241_v57 }
 0x53b   :  { %1244 = vmatpush3.bf16.msra.mxu0 %v1241_v57 }
 0x5c2   :  { %v762_v46 = vpop.xlane.xlu0 %761 }
 0x5c3   :  { %v765_v47 = vmul.f32 0.03125, %v762_v46  ;;  %v759_v48 = vpop.xlane.xlu1 %758 }
 0x5c4   :  { %v764_v49 = vmul.f32 0.03125, %v759_v48 }
 0x5c5   :  { %v767_v50 = vsub.f32 %v756_v44, %v765_v47 }
 0x5c6   :  { %v766_v51 = vsub.f32 %v755_v45, %v764_v49 }
 0x5c7   :  { %v769_v52 = vmul.f32 %v767_v50, %v767_v50 }
 0x5c8   :  { %v768_v53 = vmul.f32 %v766_v51, %v766_v51 }
 0x5c9   :  { %v773_v54 = vsel %vm33_vm0, %v769_v52, 0.0 }
 0x5ca   :  { %774 = vadd.xlane.f32.xlu0 %v773_v54  ;;  %v770_v7 = vsel %vm33_vm0, %v768_v53, 0.0 }
 0x5cb   :  { %771 = vadd.xlane.f32.xlu1 %v770_v7 }
 0x657   :  { %v775_v3 = vpop.xlane.xlu0 %774 }
 0x658   :  { %v777_v4 = vmul.f32 0.03125, %v775_v3  ;;  %v772_v6 = vpop.xlane.xlu1 %771 }
 0x659   :  { %v776_v8 = vmul.f32 0.03125, %v772_v6 }
 0x65a   :  { %v779_v9 = vadd.f32 1e-06, %v777_v4 }
 0x65b   :  { %v778_v10 = vadd.f32 1e-06, %v776_v8 }
 0x65c   :  { %1301 = vrsqrt.f32 %v779_v9 }
 0x65d   :  { %1303 = vrsqrt.f32 %v778_v10 }
 0x666   :  { %v1302_v14 = vpop.eup %1301 }
 0x667   :  { %v1304_v17 = vpop.eup %1303  ;;  %v783_v20 = vmul.f32 %v1302_v14, %v767_v50 }
 0x668   :  { %v782_v21 = vmul.f32 %v1304_v17, %v766_v51 }
 0x669   :  { %v789_v23 = vmul.f32 %v1079_v15, %v783_v20 }
 0x66a   :  { %v788_v24 = vmul.f32 %v1079_v15, %v782_v21 }
 0x66b   :  { %v795_v26 = vadd.f32 %v1080_v22, %v789_v23 }
 0x66c   :  { %v794_v25 = vadd.f32 %v1080_v22, %v788_v24 }
 0x66e   :  { %1199 = vmatprep.mubr.msk.f32.mxu0 %vm33_vm0, %v794_v25 }
 0x66f   :  { %1200 = vmatmul.mubr.msk.f32.vlgmr.msra.gmra.mrb[12].mxu0 %vm33_vm0, %v795_v26 }
 0x742   :  { %v1201_v31 = vpop.f32.mrb[12].mxu0 }
 0x743   :  { %v890_v32 = vadd.f32 %v1201_v31, %v1081_v30  ;;  %v884_v33 = vpop.f32.mrb[13].mxu0 }
 0x744   :  { %v885_v34 = vadd.f32 %v1081_v30, %v884_v33 }
 0x745   :  { %v894_v36 = vmax.f32 %v890_v32, 0.0 }
 0x746   :  { %v893_v35 = vmax.f32 %v885_v34, 0.0 }
 0x748   :  { %1218 = vmatprep.mubr.msk.f32.mxu1 %vm899_vm2, %v893_v35 }
 0x749   :  { %1219 = vmatmul.mubr.msk.f32.vlgmr.msra.gmra.mrb[8].mxu1 %vm899_vm2, %v894_v36 }
 0x81c   :  { %v1220_v38 = vpop.f32.mrb[8].mxu1 }
 0x81d   :  { %v978_v39 = vadd.f32 %v1220_v38, %v1084_v37  ;;  %v972_v40 = vpop.f32.mrb[9].mxu1 }
 0x81e   :  { %v973_v18 = vadd.f32 %v1084_v37, %v972_v40 }
 0x81f   :  { %v982_v41 = vadd.f32 %v978_v39, %v795_v26 }
 0x820   :  { %v981_v42 = vadd.f32 %v973_v18, %v794_v25 }
 0x821   :  { %v986_v11 = vsel %vm33_vm0, %v982_v41, 0.0 }
 0x822   :  { %987 = vadd.xlane.f32.xlu0 %v986_v11  ;;  %v983_v43 = vsel %vm33_vm0, %v981_v42, 0.0 }
 0x823   :  { %984 = vadd.xlane.f32.xlu1 %v983_v43 }
 0x8af   :  { %v988_v44 = vpop.xlane.xlu0 %987 }
 0x8b0   :  { %v990_v45 = vmul.f32 0.03125, %v988_v44  ;;  %v985_v12 = vpop.xlane.xlu1 %984 }
 0x8b1   :  { %v989_v19 = vmul.f32 0.03125, %v985_v12 }
 0x8b2   :  { %v992_v46 = vsub.f32 %v982_v41, %v990_v45 }
 0x8b3   :  { %v991_v47 = vsub.f32 %v981_v42, %v989_v19 }
 0x8b4   :  { %v994_v48 = vmul.f32 %v992_v46, %v992_v46 }
 0x8b5   :  { %v993_v49 = vmul.f32 %v991_v47, %v991_v47 }
 0x8b6   :  { %v998_v50 = vsel %vm33_vm0, %v994_v48, 0.0 }
 0x8b7   :  { %999 = vadd.xlane.f32.xlu0 %v998_v50  ;;  %v995_v51 = vsel %vm33_vm0, %v993_v49, 0.0 }
 0x8b8   :  { %996 = vadd.xlane.f32.xlu1 %v995_v51 }
 0x8b9   :  { %1320 = shalt.err (!%p1317_p4)
}
 0x8ba   :  { %s1321_s27 = scalar_lea.hbm %s1630_s3, 1024 }
 0x8bb   :  { %p1322_p5 = scmp.ne.s32.totalorder %s1630_s3, %s1321_s27  ;;  %p1325_p6 = scmp.lt.u32.totalorder %s1321_s27, %s1630_s3 }
 0x8bd   :  { %p1327_p7 = pnand %p1325_p6, %p1322_p5 }
 0x8bf   :  { %1330 = shalt.err (!%p1327_p7)
}
 0x8c0   :  { %s1360_s4 = smov 128   ;;  %s1361_s5 = smov 8   ;;  %v1087_v55 = vld [vmem:[%s1628_s1 + $0xc6] ss:$0 sm:$0xff]  ;;  %v1088_v58 = vld [vmem:[%s1628_s1 + $0xc7] ss:$0 sm:$0xff] }
 0x8c1   :  { %1046 = dma.vmem_to_hbm [thread:$0]  %s1041_s23, 1024, %s1630_s3, [#allocation5], %s1360_s4, %s1360_s4, %s1361_s5  }
 0x8c2   :  { %s1362_s3 = smov [#allocation2]  }
 0x8c3   :  { %s1028_s12 = sshll.u32 %s1362_s3, 4  ;;  %s1029_s12 = int_to_ptr.vmem [resolvable:$true] %s1028_s12 }
 0x8c4   :  { %s1331_s13 = scalar_lea.vmem %s1029_s12, 256  ;;  %p1336_p9 = scmp.lt.s32.totalorder %s1029_s12, %s1029_s12 }
 0x8c5   :  { %p1332_p8 = scmp.ne.s32.totalorder %s1029_s12, %s1331_s13  ;;  %p1337_p10 = scmp.lt.s32.totalorder %s1331_s13, %s1331_s13 }
 0x8c7   :  { %p1338_p11 = por %p1337_p10, %p1336_p9 }
 0x8c9   :  { %p1339_p12 = pnand %p1338_p11, %p1332_p8 }
 0x944   :  { %v1000_v52 = vpop.xlane.xlu0 %999 }
 0x945   :  { %v1002_v53 = vmul.f32 0.03125, %v1000_v52  ;;  %v997_v54 = vpop.xlane.xlu1 %996 }
 0x946   :  { %v1001_v7 = vmul.f32 0.03125, %v997_v54 }
 0x947   :  { %v1004_v5 = vadd.f32 1e-06, %v1002_v53 }
 0x948   :  { %v1003_v13 = vadd.f32 1e-06, %v1001_v7 }
 0x949   :  { %1305 = vrsqrt.f32 %v1004_v5 }
 0x94a   :  { %1307 = vrsqrt.f32 %v1003_v13 }
 0x953   :  { %v1306_v16 = vpop.eup %1305 }
 0x954   :  { %v1308_v56 = vpop.eup %1307  ;;  %v1008_v57 = vmul.f32 %v1306_v16, %v992_v46 }
 0x955   :  { %v1007_v59 = vmul.f32 %v1308_v56, %v991_v47 }
 0x956   :  { %v1014_v60 = vmul.f32 %v1087_v55, %v1008_v57 }
 0x957   :  { %v1013_v61 = vmul.f32 %v1087_v55, %v1007_v59 }
 0x958   :  { %v1020_v62 = vadd.f32 %v1088_v58, %v1014_v60 }
 0x959   :  { %v1019_v63 = vadd.f32 %v1088_v58, %v1013_v61 }
 0x95a   :  { %1022 = vst.msk [vmem:[#allocation2 + $0x8] sm:$0xff] %vm33_vm0, %v1020_v62 }
 0x95b   :  { %1021 = vst.msk [vmem:[#allocation2] sm:$0xff] %vm33_vm0, %v1019_v63 }
 0x95c   :  { %1342 = shalt.err (!%p1339_p12)
}
 0x95d   :  { %s1343_s15 = scalar_lea.hbm %s1629_s2, 256 }
 0x95e   :  { %p1344_p13 = scmp.ne.s32.totalorder %s1629_s2, %s1343_s15  ;;  %p1347_p0 = scmp.lt.u32.totalorder %s1343_s15, %s1629_s2 }
 0x960   :  { %p1349_p1 = pnand %p1347_p0, %p1344_p13 }
 0x962   :  { %1352 = shalt.err (!%p1349_p1)
}
 0x963   :  { %1034 = dma.vmem_to_hbm [thread:$0]  %s1029_s12, 256, %s1629_s2, [#allocation3], %s1360_s4, %s1360_s4, %s1361_s5  }
 0x964   :  { %1353 = dma.done.wait [#allocation3], 256  }
 0x965   :  { %1354 = vsyncadd [#allocation3], 4294967040 }
 0x966   :  { %1355 = dma.done.wait [#allocation5], 1024  }
 0x967   :  { %1356 = vsyncadd [#allocation5], 4294966272 }
 0x968   :  { %1053 = vsyncpa [#allocation3], 1 }
 0x969   :  { %1054 = vsyncpa [#allocation5], 1 }

</bundles_post_ra>
